<compile_context>
chip_gen: v5e
topology: v5e:2x2
jax: 0.10.0
libtpu: 0.0.40
codegen_flags: <defaults>
</compile_context>

<pallas_src>
import functools

import jax
import jax.numpy as jnp
from jax.experimental import pallas as pl
from jax.experimental.pallas import tpu as pltpu

ALPHA = 0.7          # HybridLoss(alpha=0.7)
MARGIN = 1.0         # nn.TripletMarginLoss default
EPS = 1e-6           # F.pairwise_distance default eps (added to the difference)


def hybrid_loss_kernel(colbert_ref, ce_ref, labels_ref, out_ref,
                       trip_acc, ce_acc, *, total_rows, tile_rows, needs_mask):
    step = pl.program_id(0)

    @pl.when(step == 0)
    def _():
        trip_acc[...] = jnp.zeros_like(trip_acc)
        ce_acc[...] = jnp.zeros_like(ce_acc)

    if needs_mask:
        # Global row ids for this tile; mask rows >= B (padded tail of the last grid step).
        row_id = jax.lax.broadcasted_iota(jnp.int32, (tile_rows, 1), 0) + step * tile_rows
        valid = row_id < total_rows                                        # (tb, 1) bool

    # ---- TripletMarginLoss (p=2, margin=1.0, eps=1e-6, reduction='mean') ----
    a = colbert_ref[0]                                                     # (tb, D)
    p = colbert_ref[1]
    n = colbert_ref[2]
    # F.pairwise_distance adds eps to the elementwise difference before the norm.
    d_ap = jnp.sqrt(jnp.sum((a - p + EPS) ** 2, axis=-1, keepdims=True))   # (tb, 1)
    d_an = jnp.sqrt(jnp.sum((a - n + EPS) ** 2, axis=-1, keepdims=True))   # (tb, 1)
    trip = jnp.maximum(d_ap - d_an + MARGIN, 0.0)
    if needs_mask:
        trip = jnp.where(valid, trip, 0.0)                                 # select: pad-safe
    trip_acc[...] += jnp.sum(trip, axis=0, keepdims=True)                  # (1, 1)

    # ---- CrossEntropyLoss (mean reduction), C kept as a full (untiled) block dim ----
    s = ce_ref[...]                                                        # (tb, C)
    m = jnp.max(s, axis=-1, keepdims=True)
    lse = m + jnp.log(jnp.sum(jnp.exp(s - m), axis=-1, keepdims=True))     # (tb, 1)
    labels = labels_ref[...]                                               # (tb, 1) int32
    cols = jax.lax.broadcasted_iota(jnp.int32, s.shape, 1)
    picked = jnp.sum(jnp.where(cols == labels, s, 0.0),
                     axis=-1, keepdims=True)                               # (tb, 1)
    ce_row = lse - picked
    if needs_mask:
        ce_row = jnp.where(valid, ce_row, 0.0)                             # select: pad-safe
    ce_acc[...] += jnp.sum(ce_row, axis=0, keepdims=True)                  # (1, 1)

    @pl.when(step == pl.num_programs(0) - 1)
    def _():
        inv_b = jnp.float32(1.0 / total_rows)
        out_ref[...] = (ALPHA * trip_acc[...] + (1.0 - ALPHA) * ce_acc[...]) * inv_b


def _choose_tile_rows(B, D, C, per_copy_budget_bytes=12 << 20):
    """Largest row tile whose single buffered copy fits the budget (keeps the
    double-buffered working set well under the 32 MiB scoped-VMEM limit we request)."""
    per_row_bytes = (3 * D + C + 1) * 4
    cap = per_copy_budget_bytes // per_row_bytes
    cap = max(8, (cap // 8) * 8)          # multiple of 8 (sublane granularity)
    if B <= cap:
        return B                          # full-B block (== array dim, always legal)
    return cap


def hybrid_loss(colbert_scores, ce_scores, labels, *, tb=None):
    """colbert_scores: [3, B, D] f32; ce_scores: [B, C] f32; labels: [B] int."""
    three, B, D = colbert_scores.shape
    assert three == 3, "colbert_scores must be stacked (anchor, positive, negative)"
    Bc, C = ce_scores.shape
    assert Bc == B

    labels2d = labels.astype(jnp.int32).reshape(B, 1)

    if tb is None:
        tb = _choose_tile_rows(B, D, C)
    assert tb == B or tb % 8 == 0, "row tile must be a multiple of 8 or the full batch"
    grid = (pl.cdiv(B, tb),)
    needs_mask = (B % tb) != 0

    kernel = functools.partial(hybrid_loss_kernel,
                               total_rows=B, tile_rows=tb, needs_mask=needs_mask)

    out = pl.pallas_call(
        kernel,
        out_shape=jax.ShapeDtypeStruct((1, 1), jnp.float32),
        grid_spec=pltpu.PrefetchScalarGridSpec(
            num_scalar_prefetch=0,
            grid=grid,
            in_specs=[
                # stacked triplet: one input, one DMA stream per tile
                pl.BlockSpec((3, tb, D), lambda i: (0, i, 0)),
                # CE logits: full C per tile so logsumexp is single-pass
                pl.BlockSpec((tb, C), lambda i: (i, 0)),
                # labels tiled consistently with ce_scores
                pl.BlockSpec((tb, 1), lambda i: (i, 0)),
            ],
            out_specs=pl.BlockSpec((1, 1), lambda i: (0, 0)),
            scratch_shapes=[
                pltpu.VMEM((1, 1), jnp.float32),   # triplet-sum accumulator
                pltpu.VMEM((1, 1), jnp.float32),   # CE-sum accumulator
            ],
        ),
        compiler_params=pltpu.CompilerParams(
            dimension_semantics=("arbitrary",),    # reduction over B -> accumulator carries
            vmem_limit_bytes=32 * 1024 * 1024,
        ),
    )(colbert_scores, ce_scores, labels2d)
    return out[0, 0]


def hybrid_loss_ref(colbert_scores, ce_scores, labels):
    """Pure-JAX reference with identical semantics (for verification)."""
    a, p, n = colbert_scores[0], colbert_scores[1], colbert_scores[2]
    d_ap = jnp.sqrt(jnp.sum((a - p + EPS) ** 2, axis=-1))
    d_an = jnp.sqrt(jnp.sum((a - n + EPS) ** 2, axis=-1))
    trip_loss = jnp.mean(jnp.maximum(d_ap - d_an + MARGIN, 0.0))
    logz = jax.nn.logsumexp(ce_scores, axis=-1)
    picked = jnp.take_along_axis(ce_scores, labels[:, None].astype(jnp.int32), axis=-1)[:, 0]
    ce_loss = jnp.mean(logz - picked)
    return ALPHA * trip_loss + (1.0 - ALPHA) * ce_loss


if __name__ == "__main__":
    key = jax.random.PRNGKey(0)
    k1, k2, k3 = jax.random.split(key, 3)

    B, D, C = 24, 128, 8
    colbert_scores = jax.random.normal(k1, (3, B, D), dtype=jnp.float32)
    ce_scores = jax.random.normal(k2, (B, C), dtype=jnp.float32)
    labels = jax.random.randint(k3, (B,), 0, C, dtype=jnp.int32)

    ref = hybrid_loss_ref(colbert_scores, ce_scores, labels)

    # Multi-step grid with a masked tail (tb=16 -> 2 steps, rows 24..31 are padding).
    out = jax.block_until_ready(hybrid_loss(colbert_scores, ce_scores, labels, tb=16))
    assert jnp.allclose(out, ref, atol=1e-5, rtol=1e-5), (out, ref)

    # Exact-multiple tile path (tb=8 -> 3 steps, no masking traced).
    out_nm = jax.block_until_ready(hybrid_loss(colbert_scores, ce_scores, labels, tb=8))
    assert jnp.allclose(out_nm, ref, atol=1e-5, rtol=1e-5), (out_nm, ref)

    # Default (auto-sized, single-step) tile path.
    out2 = jax.block_until_ready(hybrid_loss(colbert_scores, ce_scores, labels))
    assert jnp.allclose(out2, ref, atol=1e-5, rtol=1e-5), (out2, ref)

    print("KERNEL_OK")
</pallas_src>

<mosaic_0001>
module attributes {stable_mosaic.version = 11 : i64} {
  func.func @hybrid_loss_kernel(%arg0: i32, %arg1: memref<3x16x128xf32, #tpu.memory_space<vmem>>, %arg2: memref<16x8xf32, #tpu.memory_space<vmem>>, %arg3: memref<16x1xi32, #tpu.memory_space<vmem>>, %arg4: memref<1x1xf32, #tpu.memory_space<vmem>>, %arg5: memref<1x1xf32, #tpu.memory_space<vmem>>, %arg6: memref<1x1xf32, #tpu.memory_space<vmem>>) attributes {dimension_semantics = [#tpu.dimension_semantics<arbitrary>], iteration_bounds = array<i64: 2>, scalar_prefetch = 0 : i64, scratch_operands = 2 : i64, tpu.core_type = #tpu.core_type<tc>, window_params = [{transform_indices = @transform_0, window_bounds = array<i64: 3, 16, 128>}, {transform_indices = @transform_1, window_bounds = array<i64: 16, 8>}, {transform_indices = @transform_2, window_bounds = array<i64: 16, 1>}, {pipeline_mode = #tpu.pipeline_mode<synchronous>, transform_indices = @transform_3, window_bounds = array<i64: 1, 1>}]} {
    %c0_i32 = arith.constant 0 : i32
    %0 = arith.cmpi eq, %arg0, %c0_i32 : i32
    %1 = arith.extui %0 : i1 to i32
    %c0_i32_0 = arith.constant 0 : i32
    %2 = arith.cmpi ne, %1, %c0_i32_0 : i32
    scf.if %2 {
      %cst_33 = arith.constant 0.000000e+00 : f32
      %70 = vector.broadcast %cst_33 : f32 to vector<1x1xf32>
      %c0_34 = arith.constant 0 : index
      %c0_35 = arith.constant 0 : index
      %71 = vector.load %arg5[%c0_34, %c0_35] : memref<1x1xf32, #tpu.memory_space<vmem>>, vector<1x1xf32>
      tpu.vector_store %arg5[%c0_34, %c0_35], %70 {strides = array<i32>} : memref<1x1xf32, #tpu.memory_space<vmem>>, vector<1x1xf32>,
      %cst_36 = arith.constant 0.000000e+00 : f32
      %72 = vector.broadcast %cst_36 : f32 to vector<1x1xf32>
      %c0_37 = arith.constant 0 : index
      %c0_38 = arith.constant 0 : index
      %73 = vector.load %arg6[%c0_37, %c0_38] : memref<1x1xf32, #tpu.memory_space<vmem>>, vector<1x1xf32>
      tpu.vector_store %arg6[%c0_37, %c0_38], %72 {strides = array<i32>} : memref<1x1xf32, #tpu.memory_space<vmem>>, vector<1x1xf32>,
    } else {
    }
    %3 = tpu.iota {dimensions = array<i32: 0>} : vector<16x1xi32>
    %c16_i32 = arith.constant 16 : i32
    %4 = arith.muli %arg0, %c16_i32 : i32
    %5 = vector.broadcast %4 : i32 to vector<16x1xi32>
    %6 = arith.addi %3, %5 : vector<16x1xi32>
    %c24_i32 = arith.constant 24 : i32
    %7 = vector.broadcast %c24_i32 : i32 to vector<16x1xi32>
    %8 = arith.cmpi slt, %6, %7 : vector<16x1xi32>
    %c0 = arith.constant 0 : index
    %c0_1 = arith.constant 0 : index
    %c0_2 = arith.constant 0 : index
    %9 = vector.load %arg1[%c0, %c0_1, %c0_2] : memref<3x16x128xf32, #tpu.memory_space<vmem>>, vector<1x16x128xf32>
    %10 = vector.shape_cast %9 : vector<1x16x128xf32> to vector<16x128xf32>
    %c1 = arith.constant 1 : index
    %c0_3 = arith.constant 0 : index
    %c0_4 = arith.constant 0 : index
    %11 = vector.load %arg1[%c1, %c0_3, %c0_4] : memref<3x16x128xf32, #tpu.memory_space<vmem>>, vector<1x16x128xf32>
    %12 = vector.shape_cast %11 : vector<1x16x128xf32> to vector<16x128xf32>
    %c2 = arith.constant 2 : index
    %c0_5 = arith.constant 0 : index
    %c0_6 = arith.constant 0 : index
    %13 = vector.load %arg1[%c2, %c0_5, %c0_6] : memref<3x16x128xf32, #tpu.memory_space<vmem>>, vector<1x16x128xf32>
    %14 = vector.shape_cast %13 : vector<1x16x128xf32> to vector<16x128xf32>
    %15 = arith.subf %10, %12 : vector<16x128xf32>
    %cst = arith.constant 9.99999997E-7 : f32
    %16 = vector.broadcast %cst : f32 to vector<16x128xf32>
    %17 = arith.addf %15, %16 : vector<16x128xf32>
    %18 = arith.mulf %17, %17 : vector<16x128xf32>
    %cst_7 = arith.constant dense<0.000000e+00> : vector<16xf32>
    %19 = vector.multi_reduction <add>, %18, %cst_7 [1] : vector<16x128xf32> to vector<16xf32>
    %20 = vector.shape_cast %19 : vector<16xf32> to vector<16x1xf32>
    %21 = math.sqrt %20 : vector<16x1xf32>
    %22 = arith.subf %10, %14 : vector<16x128xf32>
    %cst_8 = arith.constant 9.99999997E-7 : f32
    %23 = vector.broadcast %cst_8 : f32 to vector<16x128xf32>
    %24 = arith.addf %22, %23 : vector<16x128xf32>
    %25 = arith.mulf %24, %24 : vector<16x128xf32>
    %cst_9 = arith.constant dense<0.000000e+00> : vector<16xf32>
    %26 = vector.multi_reduction <add>, %25, %cst_9 [1] : vector<16x128xf32> to vector<16xf32>
    %27 = vector.shape_cast %26 : vector<16xf32> to vector<16x1xf32>
    %28 = math.sqrt %27 : vector<16x1xf32>
    %29 = arith.subf %21, %28 : vector<16x1xf32>
    %cst_10 = arith.constant 1.000000e+00 : f32
    %30 = vector.broadcast %cst_10 : f32 to vector<16x1xf32>
    %31 = arith.addf %29, %30 : vector<16x1xf32>
    %cst_11 = arith.constant 0.000000e+00 : f32
    %32 = vector.broadcast %cst_11 : f32 to vector<16x1xf32>
    %33 = arith.maximumf %31, %32 : vector<16x1xf32>
    %cst_12 = arith.constant 0.000000e+00 : f32
    %34 = vector.broadcast %cst_12 : f32 to vector<16x1xf32>
    %35 = arith.select %8, %33, %34 : vector<16x1xi1>, vector<16x1xf32>
    %c0_13 = arith.constant 0 : index
    %c0_14 = arith.constant 0 : index
    %36 = vector.load %arg5[%c0_13, %c0_14] : memref<1x1xf32, #tpu.memory_space<vmem>>, vector<1x1xf32>
    %cst_15 = arith.constant dense<0.000000e+00> : vector<1xf32>
    %37 = vector.multi_reduction <add>, %35, %cst_15 [0] : vector<16x1xf32> to vector<1xf32>
    %38 = vector.shape_cast %37 : vector<1xf32> to vector<1x1xf32>
    %39 = arith.addf %36, %38 : vector<1x1xf32>
    %c0_16 = arith.constant 0 : index
    %c0_17 = arith.constant 0 : index
    %40 = vector.load %arg5[%c0_16, %c0_17] : memref<1x1xf32, #tpu.memory_space<vmem>>, vector<1x1xf32>
    tpu.vector_store %arg5[%c0_16, %c0_17], %39 {strides = array<i32>} : memref<1x1xf32, #tpu.memory_space<vmem>>, vector<1x1xf32>,
    %c0_18 = arith.constant 0 : index
    %c0_19 = arith.constant 0 : index
    %41 = vector.load %arg2[%c0_18, %c0_19] : memref<16x8xf32, #tpu.memory_space<vmem>>, vector<16x8xf32>
    %cst_20 = arith.constant dense<0xFF800000> : vector<16xf32>
    %42 = vector.multi_reduction <maximumf>, %41, %cst_20 [1] : vector<16x8xf32> to vector<16xf32>
    %43 = vector.shape_cast %42 : vector<16xf32> to vector<16x1xf32>
    %44 = vector.broadcast %43 : vector<16x1xf32> to vector<16x8xf32>
    %45 = arith.subf %41, %44 : vector<16x8xf32>
    %46 = math.exp %45 : vector<16x8xf32>
    %cst_21 = arith.constant dense<0.000000e+00> : vector<16xf32>
    %47 = vector.multi_reduction <add>, %46, %cst_21 [1] : vector<16x8xf32> to vector<16xf32>
    %48 = vector.shape_cast %47 : vector<16xf32> to vector<16x1xf32>
    %49 = math.log %48 : vector<16x1xf32>
    %50 = arith.addf %43, %49 : vector<16x1xf32>
    %c0_22 = arith.constant 0 : index
    %c0_23 = arith.constant 0 : index
    %51 = vector.load %arg3[%c0_22, %c0_23] : memref<16x1xi32, #tpu.memory_space<vmem>>, vector<16x1xi32>
    %52 = tpu.iota {dimensions = array<i32: 1>} : vector<16x8xi32>
    %53 = vector.broadcast %51 : vector<16x1xi32> to vector<16x8xi32>
    %54 = arith.cmpi eq, %52, %53 : vector<16x8xi32>
    %cst_24 = arith.constant 0.000000e+00 : f32
    %55 = vector.broadcast %cst_24 : f32 to vector<16x8xf32>
    %56 = arith.select %54, %41, %55 : vector<16x8xi1>, vector<16x8xf32>
    %cst_25 = arith.constant dense<0.000000e+00> : vector<16xf32>
    %57 = vector.multi_reduction <add>, %56, %cst_25 [1] : vector<16x8xf32> to vector<16xf32>
    %58 = vector.shape_cast %57 : vector<16xf32> to vector<16x1xf32>
    %59 = arith.subf %50, %58 : vector<16x1xf32>
    %cst_26 = arith.constant 0.000000e+00 : f32
    %60 = vector.broadcast %cst_26 : f32 to vector<16x1xf32>
    %61 = arith.select %8, %59, %60 : vector<16x1xi1>, vector<16x1xf32>
    %c0_27 = arith.constant 0 : index
    %c0_28 = arith.constant 0 : index
    %62 = vector.load %arg6[%c0_27, %c0_28] : memref<1x1xf32, #tpu.memory_space<vmem>>, vector<1x1xf32>
    %cst_29 = arith.constant dense<0.000000e+00> : vector<1xf32>
    %63 = vector.multi_reduction <add>, %61, %cst_29 [0] : vector<16x1xf32> to vector<1xf32>
    %64 = vector.shape_cast %63 : vector<1xf32> to vector<1x1xf32>
    %65 = arith.addf %62, %64 : vector<1x1xf32>
    %c0_30 = arith.constant 0 : index
    %c0_31 = arith.constant 0 : index
    %66 = vector.load %arg6[%c0_30, %c0_31] : memref<1x1xf32, #tpu.memory_space<vmem>>, vector<1x1xf32>
    tpu.vector_store %arg6[%c0_30, %c0_31], %65 {strides = array<i32>} : memref<1x1xf32, #tpu.memory_space<vmem>>, vector<1x1xf32>,
    %c1_i32 = arith.constant 1 : i32
    %67 = arith.cmpi eq, %arg0, %c1_i32 : i32
    %68 = arith.extui %67 : i1 to i32
    %c0_i32_32 = arith.constant 0 : i32
    %69 = arith.cmpi ne, %68, %c0_i32_32 : i32
    scf.if %69 {
      %c0_33 = arith.constant 0 : index
      %c0_34 = arith.constant 0 : index
      %70 = vector.load %arg5[%c0_33, %c0_34] : memref<1x1xf32, #tpu.memory_space<vmem>>, vector<1x1xf32>
      %cst_35 = arith.constant 0.699999988 : f32
      %71 = vector.broadcast %cst_35 : f32 to vector<1x1xf32>
      %72 = arith.mulf %71, %70 : vector<1x1xf32>
      %c0_36 = arith.constant 0 : index
      %c0_37 = arith.constant 0 : index
      %73 = vector.load %arg6[%c0_36, %c0_37] : memref<1x1xf32, #tpu.memory_space<vmem>>, vector<1x1xf32>
      %cst_38 = arith.constant 3.000000e-01 : f32
      %74 = vector.broadcast %cst_38 : f32 to vector<1x1xf32>
      %75 = arith.mulf %74, %73 : vector<1x1xf32>
      %76 = arith.addf %72, %75 : vector<1x1xf32>
      %cst_39 = arith.constant 0.0416666679 : f32
      %77 = vector.broadcast %cst_39 : f32 to vector<1x1xf32>
      %78 = arith.mulf %76, %77 : vector<1x1xf32>
      %c0_40 = arith.constant 0 : index
      %c0_41 = arith.constant 0 : index
      %79 = vector.load %arg4[%c0_40, %c0_41] : memref<1x1xf32, #tpu.memory_space<vmem>>, vector<1x1xf32>
      tpu.vector_store %arg4[%c0_40, %c0_41], %78 {strides = array<i32>} : memref<1x1xf32, #tpu.memory_space<vmem>>, vector<1x1xf32>,
    } else {
    }
    return
  }
  func.func @transform_0(%arg0: i32) -> (i32, i32, i32) {
    %c0_i32 = arith.constant 0 : i32
    %c0_i32_0 = arith.constant 0 : i32
    %c0_i32_1 = arith.constant 0 : i32
    return %c0_i32, %arg0, %c0_i32_0 : i32, i32, i32
  }
  func.func @transform_1(%arg0: i32) -> (i32, i32) {
    %c0_i32 = arith.constant 0 : i32
    %c0_i32_0 = arith.constant 0 : i32
    return %arg0, %c0_i32 : i32, i32
  }
  func.func @transform_2(%arg0: i32) -> (i32, i32) {
    %c0_i32 = arith.constant 0 : i32
    %c0_i32_0 = arith.constant 0 : i32
    return %arg0, %c0_i32 : i32, i32
  }
  func.func @transform_3(%arg0: i32) -> (i32, i32) {
    %c0_i32 = arith.constant 0 : i32
    %c0_i32_0 = arith.constant 0 : i32
    %c0_i32_1 = arith.constant 0 : i32
    return %c0_i32, %c0_i32_0 : i32, i32
  }
}

</mosaic_0001>

<bundles_post_ra>
// kernel: tpu_custom_call.1
= control target key start
LH: loop header
LB: loop body
LE: loop exit
PB: predicated region body
PF: predicated region fallthrough
CT: control target
= control target key end

     0   :  { %8 = vsyncpa [#allocation5], 0  ;;  %s885_s0 = inlined_call_operand.hbm [shape: f32[3,24,128], index: 0, kind: input, shape index: {}]   ;;  %s886_s1 = inlined_call_operand.vmem [shape: f32[24,8], index: 1, kind: input, shape index: {}]   ;;  %s887_s2 = inlined_call_operand.vmem [shape: s32[24,1], index: 2, kind: input, shape index: {}]   ;;  %s888_s3 = inlined_call_operand.hbm [shape: f32[1,1], index: 3, kind: output, shape index: {}]  }
   0x1   :  { %10 = vsyncpa [#allocation5 + $0x1], 0 }
   0x2   :  { %11 = vsyncpa [#allocation6], 0  ;;  %s758_s12 = smov 0   ;;  %s760_s13 = smov 0  }
   0x3   :  { %s762_s14 = smov 0   ;;  %s764_s15 = smov 0  }
   0x4 LB: > { %s777_s16 = sadd.s32 4294967295, %s728_s15   ;;  %s780_s17 = sadd.s32 1, %s728_s15   ;;  %s728_s15 = sphi %s764_s15, %s894_s15   ;;  %s724_s14 = sphi %s762_s14, %s893_s14   ;;  %s720_s13 = sphi %s760_s13, %s892_s13   ;;  %s716_s12 = sphi %s758_s12, %s891_s12  }
   0x5   : > { %s21_s18 = ssub.s32 %s728_s15, %s780_s17  ;;  %s24_s19 = sadd.s32 1, %s724_s14 }
   0x6   : > { %p22_p0 = scmp.eq.s32.totalorder %s21_s18, 0  ;;  %p31_p1 = scmp.ne.s32.totalorder %s724_s14, %s720_s13 }
   0x7   : > { %p32_p2 = scmp.eq.s32.totalorder %s728_s15, 0  ;;  %p37_p3 = scmp.ne.s32.totalorder %s720_s13, %s716_s12 }
   0x8   : > { %s790_s20 = scalar_select %p22_p0, %s724_s14, %s24_s19  }
   0x9   : > { %p33_p4 = por %p32_p2, %p31_p1  ;;  %p38_p5 = scmp.eq.s32.totalorder %s777_s16, 0 }
   0xa   : > { %p569_p7 = scmp.ge.s32.totalorder %s728_s15, 2 }
   0xb   : > { %p793_p6 = por %p38_p5, %p37_p3 }
   0xc   : > { %130 = sbr.rel (%p569_p7) target bundleno = 42 (0x2a), region = 16 }
  0x11   : > { %133 = sbr.rel (!%p33_p4) target bundleno = 42 (0x2a), region = 20 }
  0x16   : > { %s134_s22 = sand.u32 1, %s724_s14   ;;  %s570_s23 = sshll.u32 %s728_s15, 1 }
  0x17   : > { %s595_s24 = smul.u32 48, %s134_s22  ;;  %s140_s25 = ssub.s32 3, %s570_s23 }
  0x18   : > { %p141_p8 = scmp.lt.s32.totalorder %s140_s25, 2  ;;  %s803_s29 = scalar_lea.sflag [#allocation5], %s134_s22 }
  0x19   : > { %s138_s30 = scalar_lea.vmem [#allocation4], %s595_s24 }
  0x1a   : > { %s896_s25 = smov (!%p141_p8, %s140_s25), 2 }
  0x1b   : > { %s143_s26 = smul.u32 24, %s896_s25 }
  0x1d   : > { %s144_s27 = ssub.s32 48, %s143_s26 }
  0x1e   : > { %s145_s28 = sshll.u32 %s144_s27, 4 }
  0x1f   : > { %146 = vsyncadd %s803_s29, %s145_s28  ;;  %p806_p9 = scmp.ne.s32.totalorder %s143_s26, 0  ;;  %s594_s5 = sshll.u32 %s728_s15, 4 }
  0x20   : > { %s149_s8 = scalar_lea.hbm %s885_s0, %s594_s5  ;;  %s156_s9 = sld [smem:[#allocation0]]  }
  0x21   : > { %s164_s10 = sshll.u32 %s149_s8, 4  ;;  %s166_s11 = sshll.u32 %s138_s30, 4  ;;  %s165_s10 = int_to_ptr.hbm [resolvable:$true] %s164_s10  ;;  %s167_s11 = int_to_ptr.vmem [resolvable:$true] %s166_s11 }
  0x22   : > { %s577_s12 = smul.u32 384, %s896_s25  ;;  %s730_s18 = smov 384  }
  0x23   : > { %173 = sst [smem:[#allocation9]] %s730_s18  ;;  %s731_s19 = smov 256  }
  0x24   : > { %175 = sst [smem:[#allocation9 + $0x1]] %s731_s19  ;;  %s732_s24 = smov 128  }
  0x25   : > { %177 = sst [smem:[#allocation9 + $0x2]] %s896_s25  ;;  %s733_s26 = smov 8  }
  0x26   : > { %s575_s22 = sshll.u32 %s156_s9, 26  ;;  %179 = sst [smem:[#allocation9 + $0x3]] %s732_s24 }
  0x27   : > { %s576_s23 = sadd.s32 134217728, %s575_s22  ;;  %181 = sst [smem:[#allocation9 + $0x4]] %s732_s24 }
  0x28   : > { %183 = sst [smem:[#allocation9 + $0x5]] %s733_s26  ;;  %s734_s27 = smov [#allocation8]  }
  0x29   : > { %185 = dma.general (%p806_p9), %s165_s10, %s577_s12, %s167_s11, %s803_s29, %s734_s27, [#allocation9], %s576_s23, 0  }
  0x2a PF: > { %p578_p10 = scmp.ge.s32.totalorder %s728_s15, 1  ;;  %p221_p11 = scmp.lt.s32.totalorder %s728_s15, 3 }
  0x2c   : > { %p222_p12 = pnand %p578_p10, %p221_p11 }
  0x2d   : > { %s227_s25 = sand.u32 (!%p222_p12), 1, %s720_s13  }
  0x2e   : > { %225 = sbr.rel (%p222_p12) target bundleno = 366 (0x16e), region = 32  ;;  %s228_s30 = scalar_lea.sflag (!%p222_p12), [#allocation5], %s227_s25 }
  0x2f   : > { %s596_s28 = smul.u32 (!%p222_p12), 48, %s227_s25 }
  0x31   : > { %s822_s5 = scalar_lea.vmem (!%p222_p12), [#allocation4], %s596_s28 }
  0x33   : > { %707 = dma.done.wait (%p793_p6), %s228_s30, 768  }
  0x34   : > { %709 = vsyncadd (%p793_p6), %s228_s30, 4294966528  ;;  %s579_s29 = sshll.u32 %s777_s16, 1  ;;  %p583_p0 = scmp.ne.s32.totalorder %s777_s16, 0 }
  0x35   : > { %p278_p13 = scmp.lt.s32.totalorder %s579_s29, 2 }
  0x36   : > { %304 = sbr.rel (%p583_p0) target bundleno = 62 (0x3e), region = 40 }
  0x37   : > { %s898_s29 = smov (!%p278_p13, %s579_s29), 2 }
  0x38   : > { %s580_s4 = sshll.u32 %s898_s29, 3 }
  0x39   : > { %s281_s7 = scalar_lea.vmem %s886_s1, %s580_s4  ;;  %s295_s10 = scalar_lea.vmem %s887_s2, %s580_s4 }
  0x3b   : > { %vm305_vm0 = vcmask 0   ;;  %v735_v0 = vmov 0.0  }
  0x3c   : > { %306 = vst.msk [vmem:[#allocation2] sm:$0x1] %vm305_vm0, %v735_v0 }
  0x3d   : > { %307 = vst.msk [vmem:[#allocation3] sm:$0x1] %vm305_vm0, %v735_v0 }
  0x3e PF: > { %v412_v1 = vld [vmem:[%s281_s7] sm:$0xff]  ;;  %vm414_vm1 = vcmask 64512   ;;  %v736_v4 = vmov 0   ;;  %v413_v8 = vld [vmem:[%s281_s7 + $0x8] sm:$0xff]  ;;  %v308_v29 = vlaneseq  ;;  %s584_s21 = sshll.u32 %s777_s16, 4  ;;  %vm410_vm14 = vcmask 0  }
  0x3f   : > { %v439_v2 = vld [vmem:[%s295_s10] sm:$0xff]  ;;  %v415_v3 = vsel %vm414_vm1, %v412_v1, -inf  ;;  %644 = vset.pattern.permute.xlu1 %v736_v4  ;;  %645 = vset.pattern.permute.xlu0 %v736_v4  ;;  %v418_v11 = vsel %vm414_vm1, %v413_v8, -inf  ;;  %v440_v12 = vld [vmem:[%s295_s10 + $0x8] sm:$0xff]  ;;  %p589_p1 = scmp.ne.s32.totalorder %s777_s16, 1 }
  0x40   : > { %v317_v5 = vld [vmem:[%s822_s5] sm:$0xff]  ;;  %v585_v6 = vld [vmem:[%s822_s5 + $0x10] sm:$0xff]  ;;  %416 = vmax.xlane.f32.xlu0 %v415_v3  ;;  %444 = vperm.xlu1 %644, %v439_v2   ;;  %v318_v13 = vld [vmem:[%s822_s5 + $0x8] sm:$0xff]  ;;  %v442_v31 = vand.u32 127, %v308_v29 }
  0x41   : > { %v325_v7 = vsub.f32 %v317_v5, %v585_v6  ;;  %v587_v14 = vld [vmem:[%s822_s5 + $0x20] sm:$0xff]  ;;  %v586_v15 = vld [vmem:[%s822_s5 + $0x18] sm:$0xff]  ;;  %v588_v22 = vld [vmem:[%s822_s5 + $0x28] sm:$0xff] }
  0x42   : > { %v359_v16 = vsub.f32 %v317_v5, %v587_v14  ;;  %v326_v17 = vsub.f32 %v318_v13, %v586_v15  ;;  %v360_v23 = vsub.f32 %v318_v13, %v588_v22 }
  0x43   : > { %v327_v9 = vadd.f32 1e-06, %v325_v7 }
  0x44   : > { %v361_v18 = vadd.f32 1e-06, %v359_v16  ;;  %v328_v19 = vadd.f32 1e-06, %v326_v17  ;;  %v362_v24 = vadd.f32 1e-06, %v360_v23 }
  0x45   : > { %v329_v10 = vmul.f32 %v327_v9, %v327_v9 }
  0x46   : > { %v363_v20 = vmul.f32 %v361_v18, %v361_v18  ;;  %v330_v21 = vmul.f32 %v328_v19, %v328_v19  ;;  %v364_v25 = vmul.f32 %v362_v24, %v362_v24  ;;  %v309_v19 = vshrl.u32 %v308_v29, 7 }
  0x47   : > { %331 = vadd.xlane.f32.xlu2 %v329_v10 }
  0x48   : > { %419 = vmax.xlane.f32.xlu0 %v418_v11  ;;  %447 = vperm.xlu1 %644, %v440_v12   ;;  %v310_v24 = vadd.s32 8, %v309_v19 }
  0x4f   : > { %333 = vadd.xlane.f32.xlu2 %v330_v21 }
  0x50   : > { %365 = vadd.xlane.f32.xlu0 %v363_v20 }
  0x72   : > { %367 = vadd.xlane.f32.xlu1 %v364_v25  ;;  %v312_v25 = vstv %s584_s21 }
  0xb2   : > { %v445_v33 = vpop.permute.xlu1 %444 }
  0xb3   : > { %v844_v26 = vpop.xlane.xlu0 %416  ;;  %vm449_vm2 = vcmp.eq.s32.totalorder %v442_v31, %v445_v33 }
  0xb4   : > { %v421_v27 = vsub.f32 %v412_v1, %v844_v26  ;;  %v451_v37 = vsel %vm449_vm2, %v412_v1, 0.0 }
  0xb5   : > { %v453_v38 = vsel %vm414_vm1, %v451_v37, 0.0 }
  0xb6   : > { %v423_v28 = vmul.f32 1.442695, %v421_v27 }
  0xb8   : > { %646 = vpow2.f32 %v423_v28 }
  0xba   : > { %v448_v40 = vpop.permute.xlu1 %447  ;;  %v332_v44 = vpop.xlane.xlu2 %331 }
  0xbb   : > { %v847_v30 = vpop.xlane.xlu0 %419  ;;  %vm450_vm3 = vcmp.eq.s32.totalorder %v442_v31, %v448_v40  ;;  %vm342_vm5 = vcmp.eq.f32.partialorder %v332_v44, inf  ;;  %v345_v13 = vand.u32 2147483648, %v332_v44  ;;  %vm344_vm7 = vcmp.eq.f32.partialorder %v332_v44, 0.0 }
  0xbc   : > { %v422_v32 = vsub.f32 %v413_v8, %v847_v30  ;;  %v452_v42 = vsel %vm450_vm3, %v413_v8, 0.0 }
  0xbd   : > { %v456_v43 = vsel %vm414_vm1, %v452_v42, 0.0 }
  0xbe   : > { %v647_v34 = vpop.eup %646  ;;  %v425_v35 = vmul.f32 1.442695, %v422_v32  ;;  %v313_v32 = vadd.s32 %v312_v25, %v309_v19 }
  0xbf   : > { %v427_v36 = vsel %vm414_vm1, %v647_v34, 0.0  ;;  %v314_v34 = vadd.s32 %v312_v25, %v310_v24 }
  0xc0   : > { %648 = vpow2.f32 %v425_v35  ;;  %428 = vadd.xlane.f32.xlu2 %v427_v36  ;;  %vm315_vm12 = vcmp.lt.s32.totalorder %v313_v32, 24 }
  0xc1   : > { %650 = vrsqrt.f32 %v332_v44  ;;  %vm316_vm13 = vcmp.lt.s32.totalorder %v314_v34, 24 }
  0xc2   : > { %v334_v46 = vpop.xlane.xlu2 %333 }
  0xc3   : > { %v366_v45 = vpop.xlane.xlu0 %365  ;;  %vm354_vm9 = vcmp.eq.f32.partialorder %v334_v46, inf  ;;  %vm356_vm10 = vcmp.eq.f32.partialorder %v334_v46, 0.0  ;;  %v357_v22 = vand.u32 2147483648, %v334_v46 }
  0xc4   : > { %652 = vrsqrt.f32 %v366_v45  ;;  %vm376_vm6 = vcmp.eq.f32.partialorder %v366_v45, inf  ;;  %v379_v14 = vand.u32 2147483648, %v366_v45  ;;  %vm378_vm8 = vcmp.eq.f32.partialorder %v366_v45, 0.0 }
  0xc5   : > { %654 = vrsqrt.f32 %v334_v46 }
  0xc6   : > { %v649_v39 = vpop.eup %648 }
  0xc7   : > { %v430_v41 = vsel %vm414_vm1, %v649_v39, 0.0  ;;  %v651_v48 = vpop.eup %650 }
  0xc8   : > { %431 = vadd.xlane.f32.xlu0 %v430_v41  ;;  %454 = vadd.xlane.f32.xlu2 %v453_v38  ;;  %v336_v52 = vmul.f32 %v651_v48, %v332_v44 }
  0xca   : > { %v653_v49 = vpop.eup %652  ;;  %v337_v57 = vmul.f32 %v651_v48, %v336_v52 }
  0xcb   : > { %v655_v50 = vpop.eup %654  ;;  %v370_v53 = vmul.f32 %v653_v49, %v366_v45 }
  0xcc   : > { %v348_v54 = vmul.f32 %v655_v50, %v334_v46  ;;  %v338_v61 = vmul.f32 0.5, %v337_v57 }
  0xcd   : > { %v371_v58 = vmul.f32 %v653_v49, %v370_v53 }
  0xce   : > { %v349_v59 = vmul.f32 %v655_v50, %v348_v54  ;;  %v339_v1 = vsub.f32 1.5, %v338_v61 }
  0xcf   : > { %v372_v62 = vmul.f32 0.5, %v371_v58 }
  0xd0   : > { %457 = vadd.xlane.f32.xlu0 %v456_v43  ;;  %v350_v63 = vmul.f32 0.5, %v349_v59  ;;  %v340_v5 = vmul.f32 %v651_v48, %v339_v1 }
  0xd1   : > { %v373_v2 = vsub.f32 1.5, %v372_v62 }
  0xd2   : > { %v351_v3 = vsub.f32 1.5, %v350_v63  ;;  %v341_v10 = vmul.f32 %v340_v5, %v332_v44 }
  0xd3   : > { %v374_v6 = vmul.f32 %v653_v49, %v373_v2 }
  0xd4   : > { %v352_v7 = vmul.f32 %v655_v50, %v351_v3  ;;  %v343_v15 = vsel %vm342_vm5, %v332_v44, %v341_v10 }
  0xd5   : > { %v375_v11 = vmul.f32 %v374_v6, %v366_v45  ;;  %v346_v17 = vsel %vm344_vm7, %v345_v13, %v343_v15 }
  0xd6   : > { %v353_v12 = vmul.f32 %v352_v7, %v334_v46 }
  0xd7   : > { %v377_v16 = vsel %vm376_vm6, %v366_v45, %v375_v11  ;;  %v401_v45 = vld [vmem:[#allocation2] sm:$0x1] }
  0xd8   : > { %v380_v18 = vsel %vm378_vm8, %v379_v14, %v377_v16  ;;  %v355_v21 = vsel %vm354_vm9, %v334_v46, %v353_v12 }
  0xd9   : > { %v393_v20 = vsub.f32 %v346_v17, %v380_v18  ;;  %v358_v28 = vsel %vm356_vm10, %v357_v22, %v355_v21 }
  0xdb   : > { %v395_v27 = vadd.f32 1.0, %v393_v20 }
  0xdd   : > { %v397_v35 = vmax.f32 %v395_v27, 0.0 }
  0xdf   : > { %v399_v29 = vsel %vm315_vm12, %v397_v35, 0.0 }
  0xe5   : > { %v368_v47 = vpop.xlane.xlu1 %367 }
  0xe6   : > { %656 = vrsqrt.f32 %v368_v47  ;;  %vm388_vm4 = vcmp.eq.f32.partialorder %v368_v47, inf  ;;  %v391_v8 = vand.u32 2147483648, %v368_v47  ;;  %vm390_vm11 = vcmp.eq.f32.partialorder %v368_v47, 0.0 }
  0xec   : > { %v657_v51 = vpop.eup %656 }
  0xed   : > { %v382_v55 = vmul.f32 %v657_v51, %v368_v47 }
  0xef   : > { %v383_v56 = vmul.f32 %v657_v51, %v382_v55 }
  0xf1   : > { %v384_v60 = vmul.f32 0.5, %v383_v56 }
  0xf3   : > { %v385_v0 = vsub.f32 1.5, %v384_v60 }
  0xf5   : > { %v386_v4 = vmul.f32 %v657_v51, %v385_v0 }
  0xf7   : > { %v387_v9 = vmul.f32 %v386_v4, %v368_v47  ;;  %v463_v4 = vld [vmem:[#allocation3] sm:$0x1] }
  0xf9   : > { %v389_v23 = vsel %vm388_vm4, %v368_v47, %v387_v9 }
  0xfa   : > { %v392_v31 = vsel %vm390_vm11, %v391_v8, %v389_v23 }
  0xfb   : > { %v394_v33 = vsub.f32 %v358_v28, %v392_v31 }
  0xfd   : > { %v396_v36 = vadd.f32 1.0, %v394_v33 }
  0xff   : > { %v398_v37 = vmax.f32 %v396_v36, 0.0 }
 0x101   : > { %v400_v38 = vsel %vm316_vm13, %v398_v37, 0.0 }
 0x102   : > { %v402_v39 = vadd.f32 %v400_v38, %v399_v29 }
 0x104   : > { %v403_v40 = vrot.slane %v402_v39, 4 }
 0x106   : > { %v404_v41 = vadd.f32 %v403_v40, %v402_v39 }
 0x108   : > { %v405_v42 = vrot.slane %v404_v41, 2 }
 0x10a   : > { %v406_v43 = vadd.f32 %v405_v42, %v404_v41 }
 0x10c   : > { %v407_v44 = vrot.slane %v406_v43, 1 }
 0x10e   : > { %v408_v46 = vadd.f32 %v407_v44, %v406_v43 }
 0x110   : > { %v409_v47 = vadd.f32 %v408_v46, %v401_v45 }
 0x112   : > { %411 = vst.msk [vmem:[#allocation2] sm:$0x1] %vm410_vm14, %v409_v47 }
 0x133   : > { %v429_v48 = vpop.xlane.xlu2 %428 }
 0x134   : > { %658 = vlog2.f32 %v429_v48 }
 0x13a   : > { %v659_v49 = vpop.eup %658 }
 0x13b   : > { %v432_v50 = vpop.xlane.xlu0 %431  ;;  %v434_v51 = vmul.f32 0.6931472, %v659_v49  ;;  %v455_v54 = vpop.xlane.xlu2 %454 }
 0x13c   : > { %660 = vlog2.f32 %v432_v50 }
 0x13d   : > { %v437_v52 = vadd.f32 %v434_v51, %v844_v26 }
 0x13f   : > { %v459_v56 = vsub.f32 %v437_v52, %v455_v54 }
 0x141   : > { %v461_v60 = vsel %vm315_vm12, %v459_v56, 0.0 }
 0x142   : > { %v661_v53 = vpop.eup %660 }
 0x143   : > { %v436_v55 = vmul.f32 0.6931472, %v661_v53  ;;  %v458_v58 = vpop.xlane.xlu0 %457 }
 0x145   : > { %v438_v57 = vadd.f32 %v436_v55, %v847_v30 }
 0x147   : > { %v460_v59 = vsub.f32 %v438_v57, %v458_v58 }
 0x149   : > { %v462_v61 = vsel %vm316_vm13, %v460_v59, 0.0 }
 0x14a   : > { %v464_v62 = vadd.f32 %v462_v61, %v461_v60 }
 0x14c   : > { %v465_v63 = vrot.slane %v464_v62, 4 }
 0x14e   : > { %v466_v0 = vadd.f32 %v465_v63, %v464_v62 }
 0x150   : > { %v467_v1 = vrot.slane %v466_v0, 2 }
 0x152   : > { %v468_v2 = vadd.f32 %v467_v1, %v466_v0 }
 0x154   : > { %v469_v3 = vrot.slane %v468_v2, 1 }
 0x156   : > { %v470_v26 = vadd.f32 %v469_v3, %v468_v2  ;;  %476 = sbr.rel (%p589_p1) target bundleno = 361 (0x169), region = 44 }
 0x158   : > { %v471_v5 = vadd.f32 %v470_v26, %v463_v4 }
 0x15a   : > { %472 = vst.msk [vmem:[#allocation3] sm:$0x1] %vm410_vm14, %v471_v5 }
 0x15b   : > { %v477_v30 = vld [vmem:[#allocation2] sm:$0x1] }
 0x15c   : > { %v478_v7 = vmul.f32 0.7, %v477_v30 }
 0x161   : > { %v479_v6 = vld [vmem:[#allocation3] sm:$0x1] }
 0x162   : > { %v480_v8 = vmul.f32 0.3, %v479_v6 }
 0x164   : > { %v481_v9 = vadd.f32 %v480_v8, %v478_v7 }
 0x166   : > { %v482_v10 = vmul.f32 0.041666668, %v481_v9 }
 0x168   : > { %483 = vst.msk [vmem:[#allocation7] sm:$0x1] %vm410_vm14, %v482_v10 }
 0x169 PF: > { %p602_p2 = scmp.eq.s32.totalorder %s777_s16, 1  ;;  %s737_s11 = smov [#allocation7]  }
 0x16a   : > { %s490_s12 = sshll.u32 %s737_s11, 4  ;;  %s492_s22 = sshll.u32 %s888_s3, 4  ;;  %s491_s12 = int_to_ptr.vmem [resolvable:$true] %s490_s12  ;;  %s493_s22 = int_to_ptr.hbm [resolvable:$true] %s492_s22 }
 0x16b   : > { %599 = dma.vmem_to_hbm [thread:$0]  (%p602_p2), %s491_s12, 16, %s493_s22, [#allocation6]  }
 0x16c   : > { %711 = dma.done.wait (%p602_p2), [#allocation6], 16  }
 0x16d   : > { %713 = vsyncadd (%p602_p2), [#allocation6], 4294967280 }
 0x16e PF: > { %p14_p3 = scmp.ge.s32.totalorder %s780_s17, 4   ;;  %s891_s12 = smov %s720_s13 }
 0x16f   : > { %s892_s13 = smov %s724_s14  ;;  %s893_s14 = smov %s790_s20 }
 0x170   : > { %s894_s15 = smov %s780_s17  ;;  %16 = sbr.rel (!%p14_p3) target bundleno = 4 (0x4), region = 90 }
 0x175   :  { %506 = vsyncpa [#allocation5], 1 }
 0x176   :  { %508 = vsyncpa [#allocation5 + $0x1], 1 }
 0x177   :  { %509 = vsyncpa [#allocation6], 1 }
 0x178   :  { %511 = vsyncpa [#allocation6 + $0x1], 1 }

</bundles_post_ra>
